<compile_context>
chip_gen: v6e
topology: v6e:2x2x1
jax: 0.10.0
libtpu: 0.0.40
codegen_flags: <defaults>
</compile_context>

<pallas_src>
import functools

import jax
import jax.numpy as jnp
from jax.experimental import pallas as pl
from jax.experimental.pallas import tpu as pltpu

HIDDEN = 64


def pi_mlp_kernel(xT_ref, w1_ref, b1_ref, w2_ref, b2_ref, oT_ref):
    # Hidden layer: W1 @ x -> (hidden, TB); f32 accumulation on the MXU.
    h = jnp.dot(w1_ref[...], xT_ref[...], preferred_element_type=jnp.float32)
    h = jnp.maximum(h + b1_ref[...], 0.0)  # bias + ReLU on the VPU, lane-dense
    # Output layer: W2 @ h -> (out_dim, TB); keep second GEMM bf16-native.
    y = jnp.dot(w2_ref[...], h.astype(w2_ref.dtype),
                preferred_element_type=jnp.float32)
    oT_ref[...] = (y + b2_ref[...]).astype(oT_ref.dtype)


def _round_up(x, m):
    return ((x + m - 1) // m) * m


def _choose_tiling(B, tile_b, min_tiles):
    """Pick (tb, B_pad, num_tiles) minimizing padding.

    num_tiles is chosen first (enough to keep tiles <= tile_b, and at least
    `min_tiles` when the batch allows, so v7x's two TensorCores both get work),
    then tb = round_up(cdiv(B, num_tiles), 128) so B_pad = num_tiles*tb wastes
    at most 127 columns per tile instead of up to tile_b-128.
    """
    tile_b = _round_up(max(tile_b, 128), 128)
    b128 = _round_up(B, 128)
    num_tiles = max(pl.cdiv(b128, tile_b), min(min_tiles, b128 // 128))
    tb = _round_up(pl.cdiv(B, num_tiles), 128)
    return tb, num_tiles * tb, num_tiles


@functools.partial(
    jax.jit,
    static_argnames=("tile_b", "min_tiles", "compute_dtype", "out_dtype"))
def pi_forward_T(x, w1, b1, w2, b2, *, tile_b=16384, min_tiles=2,
                 compute_dtype=jnp.bfloat16, out_dtype=jnp.float32):
    """Lane-dense forward pass: returns logits of shape (out_dim, B_pad).

    Columns [B:] are padding garbage (relu(b1)-derived) and must be ignored by
    the consumer.  Preferred entry point when the consumer can work in
    feature-major layout (e.g. log-softmax over axis 0) and avoid the extra
    HBM transpose pass that `pi_forward` pays for module-semantic output.

    x : (B, in_dim) float32   (PyTorch layout)
    w1: (hidden, in_dim), b1: (hidden,)       -- nn.Linear native layout
    w2: (out_dim, hidden), b2: (out_dim,)
    """
    B, in_dim = x.shape
    hidden = w1.shape[0]
    out_dim = w2.shape[0]

    tb, B_pad, num_tiles = _choose_tiling(B, tile_b, min_tiles)

    # Layout plumbing (single fused XLA pass): batch -> lane axis, pad, cast.
    xT = jnp.pad(x.astype(compute_dtype).T, ((0, 0), (0, B_pad - B)))
    w1c = w1.astype(compute_dtype)                    # (hidden, in_dim)
    w2c = w2.astype(compute_dtype)                    # (out_dim, hidden)
    b1c = b1.reshape(hidden, 1).astype(jnp.float32)
    b2c = b2.reshape(out_dim, 1).astype(jnp.float32)

    out_itemsize = jnp.dtype(out_dtype).itemsize
    flops = 2 * B_pad * (in_dim * hidden + hidden * out_dim)
    bytes_accessed = (xT.size * xT.dtype.itemsize
                      + w1c.size * w1c.dtype.itemsize
                      + w2c.size * w2c.dtype.itemsize
                      + b1c.size * 4 + b2c.size * 4
                      + out_dim * B_pad * out_itemsize)

    return pl.pallas_call(
        pi_mlp_kernel,
        out_shape=jax.ShapeDtypeStruct((out_dim, B_pad), out_dtype),
        grid_spec=pl.GridSpec(
            grid=(num_tiles,),
            in_specs=[
                pl.BlockSpec((in_dim, tb), lambda i: (0, i)),       # x tile (pipelined)
                pl.BlockSpec((hidden, in_dim), lambda i: (0, 0)),   # W1: VMEM-resident
                pl.BlockSpec((hidden, 1), lambda i: (0, 0)),        # b1: VMEM-resident
                pl.BlockSpec((out_dim, hidden), lambda i: (0, 0)),  # W2: VMEM-resident
                pl.BlockSpec((out_dim, 1), lambda i: (0, 0)),       # b2: VMEM-resident
            ],
            out_specs=pl.BlockSpec((out_dim, tb), lambda i: (0, i)),
        ),
        compiler_params=pltpu.CompilerParams(
            # >=2 tiles for large batches lets v7x shard across both TCs.
            dimension_semantics=("parallel",),
        ),
        cost_estimate=pl.CostEstimate(
            flops=flops, transcendentals=0, bytes_accessed=bytes_accessed),
    )(xT, w1c, b1c, w2c, b2c)


def pi_forward(x, w1, b1, w2, b2, *, tile_b=16384, min_tiles=2,
               compute_dtype=jnp.bfloat16, out_dtype=jnp.float32):
    """Module-semantic forward: returns (B, out_dim) logits.

    Note: the final slice+transpose is an extra HBM pass over the logits; use
    `pi_forward_T` directly if the consumer can operate on (out_dim, B).
    """
    B = x.shape[0]
    oT = pi_forward_T(x, w1, b1, w2, b2, tile_b=tile_b, min_tiles=min_tiles,
                      compute_dtype=compute_dtype, out_dtype=out_dtype)
    return oT[:, :B].T


def init_pi_params(key, in_dim, out_dim, hidden=HIDDEN):
    """nn.Linear-style uniform(-1/sqrt(fan_in), +1/sqrt(fan_in)) init.

    Weights kept in PyTorch's native (out_features, in_features) layout.
    """
    k1, k2, k3, k4 = jax.random.split(key, 4)
    bound1 = 1.0 / jnp.sqrt(float(in_dim))
    bound2 = 1.0 / jnp.sqrt(float(hidden))
    w1 = jax.random.uniform(k1, (hidden, in_dim), jnp.float32, -bound1, bound1)
    b1 = jax.random.uniform(k2, (hidden,), jnp.float32, -bound1, bound1)
    w2 = jax.random.uniform(k3, (out_dim, hidden), jnp.float32, -bound2, bound2)
    b2 = jax.random.uniform(k4, (out_dim,), jnp.float32, -bound2, bound2)
    return w1, b1, w2, b2


def reference_forward(x, w1, b1, w2, b2, compute_dtype=jnp.bfloat16):
    """Plain-JAX reference matching the kernel's dtype handling."""
    f32 = jnp.float32
    hi = jax.lax.Precision.HIGHEST
    xc = x.astype(compute_dtype).astype(f32)
    w1c = w1.astype(compute_dtype).astype(f32)
    w2c = w2.astype(compute_dtype).astype(f32)
    h = jnp.maximum(jnp.matmul(xc, w1c.T, precision=hi) + b1, 0.0)
    hc = h.astype(compute_dtype).astype(f32)
    return jnp.matmul(hc, w2c.T, precision=hi) + b2


if __name__ == "__main__":
    key = jax.random.PRNGKey(0)
    kx, kp, kx2 = jax.random.split(key, 3)

    # Typical REINFORCE/CartPole-ish sizes: state dim 4, 2 actions, batch 2.
    batch, in_dim, out_dim = 2, 4, 2
    x = jax.random.normal(kx, (batch, in_dim), dtype=jnp.float32)
    w1, b1, w2, b2 = init_pi_params(kp, in_dim, out_dim)

    logits = jax.block_until_ready(pi_forward(x, w1, b1, w2, b2))
    ref = reference_forward(x, w1, b1, w2, b2)
    assert logits.shape == (batch, out_dim)
    assert jnp.allclose(logits, ref, atol=2e-2, rtol=2e-2), "mismatch (small batch)"

    # Larger rollout batch exercises the multi-tile, low-padding path:
    # B=2304 -> 2 tiles of 1152 (zero padding), sharded over v7x's 2 TCs.
    big_b = 2304
    xb = jax.random.normal(kx2, (big_b, in_dim), dtype=jnp.float32)
    logits_big = jax.block_until_ready(pi_forward(xb, w1, b1, w2, b2))
    ref_big = reference_forward(xb, w1, b1, w2, b2)
    assert logits_big.shape == (big_b, out_dim)
    assert jnp.allclose(logits_big, ref_big, atol=2e-2, rtol=2e-2), "mismatch (big batch)"

    # Lane-dense (out_dim, B_pad) path that skips the output transpose pass.
    oT = jax.block_until_ready(pi_forward_T(xb, w1, b1, w2, b2))
    assert oT.shape[0] == out_dim and oT.shape[1] >= big_b
    assert jnp.allclose(oT[:, :big_b].T, ref_big, atol=2e-2, rtol=2e-2), "mismatch (T path)"

    # NOTE: `act()`'s Categorical sampling / log_prob bookkeeping and the
    # on-policy reward lists are host-side policy logic, not part of the
    # forward hot path, so they are intentionally not in-kernel.
    print("KERNEL_OK")
</pallas_src>

<mosaic_0001>
module attributes {stable_mosaic.version = 11 : i64} {
  func.func @pi_mlp_kernel(%arg0: i32, %arg1: memref<4x128xbf16, #tpu.memory_space<vmem>>, %arg2: memref<64x4xbf16, #tpu.memory_space<vmem>>, %arg3: memref<64x1xf32, #tpu.memory_space<vmem>>, %arg4: memref<2x64xbf16, #tpu.memory_space<vmem>>, %arg5: memref<2x1xf32, #tpu.memory_space<vmem>>, %arg6: memref<2x128xf32, #tpu.memory_space<vmem>>) attributes {dimension_semantics = [#tpu.dimension_semantics<parallel>], iteration_bounds = array<i64: 1>, scalar_prefetch = 0 : i64, scratch_operands = 0 : i64, tpu.core_type = #tpu.core_type<tc>, window_params = [{transform_indices = @transform_0, window_bounds = array<i64: 4, 128>}, {pipeline_mode = #tpu.pipeline_mode<synchronous>, transform_indices = @transform_1, window_bounds = array<i64: 64, 4>}, {pipeline_mode = #tpu.pipeline_mode<synchronous>, transform_indices = @transform_2, window_bounds = array<i64: 64, 1>}, {pipeline_mode = #tpu.pipeline_mode<synchronous>, transform_indices = @transform_3, window_bounds = array<i64: 2, 64>}, {pipeline_mode = #tpu.pipeline_mode<synchronous>, transform_indices = @transform_4, window_bounds = array<i64: 2, 1>}, {transform_indices = @transform_5, window_bounds = array<i64: 2, 128>}]} {
    %c0 = arith.constant 0 : index
    %c0_0 = arith.constant 0 : index
    %0 = vector.load %arg2[%c0, %c0_0] : memref<64x4xbf16, #tpu.memory_space<vmem>>, vector<64x4xbf16>
    %c0_1 = arith.constant 0 : index
    %c0_2 = arith.constant 0 : index
    %1 = vector.load %arg1[%c0_1, %c0_2] : memref<4x128xbf16, #tpu.memory_space<vmem>>, vector<4x128xbf16>
    %cst = arith.constant dense<0.000000e+00> : vector<64x128xf32>
    %2 = tpu.matmul %0, %1, %cst {dimension_numbers = #tpu.dot_dimension_numbers<[1], [0], [0], [1], [0, 0, 1, 1], [], []>} : vector<64x4xbf16>, vector<4x128xbf16>, vector<64x128xf32> -> vector<64x128xf32>
    %c0_3 = arith.constant 0 : index
    %c0_4 = arith.constant 0 : index
    %3 = vector.load %arg3[%c0_3, %c0_4] : memref<64x1xf32, #tpu.memory_space<vmem>>, vector<64x1xf32>
    %4 = vector.broadcast %3 : vector<64x1xf32> to vector<64x128xf32>
    %5 = arith.addf %2, %4 : vector<64x128xf32>
    %cst_5 = arith.constant 0.000000e+00 : f32
    %6 = vector.broadcast %cst_5 : f32 to vector<64x128xf32>
    %7 = arith.maximumf %5, %6 : vector<64x128xf32>
    %c0_6 = arith.constant 0 : index
    %c0_7 = arith.constant 0 : index
    %8 = vector.load %arg4[%c0_6, %c0_7] : memref<2x64xbf16, #tpu.memory_space<vmem>>, vector<2x64xbf16>
    %9 = arith.truncf %7 : vector<64x128xf32> to vector<64x128xbf16>
    %cst_8 = arith.constant dense<0.000000e+00> : vector<2x128xf32>
    %10 = tpu.matmul %8, %9, %cst_8 {dimension_numbers = #tpu.dot_dimension_numbers<[1], [0], [0], [1], [0, 0, 1, 1], [], []>} : vector<2x64xbf16>, vector<64x128xbf16>, vector<2x128xf32> -> vector<2x128xf32>
    %c0_9 = arith.constant 0 : index
    %c0_10 = arith.constant 0 : index
    %11 = vector.load %arg5[%c0_9, %c0_10] : memref<2x1xf32, #tpu.memory_space<vmem>>, vector<2x1xf32>
    %12 = vector.broadcast %11 : vector<2x1xf32> to vector<2x128xf32>
    %13 = arith.addf %10, %12 : vector<2x128xf32>
    %c0_11 = arith.constant 0 : index
    %c0_12 = arith.constant 0 : index
    %14 = vector.load %arg6[%c0_11, %c0_12] : memref<2x128xf32, #tpu.memory_space<vmem>>, vector<2x128xf32>
    tpu.vector_store %arg6[%c0_11, %c0_12], %13 {strides = array<i32>} : memref<2x128xf32, #tpu.memory_space<vmem>>, vector<2x128xf32>,
    return
  }
  func.func @transform_0(%arg0: i32) -> (i32, i32) {
    %c0_i32 = arith.constant 0 : i32
    %c0_i32_0 = arith.constant 0 : i32
    return %c0_i32, %arg0 : i32, i32
  }
  func.func @transform_1(%arg0: i32) -> (i32, i32) {
    %c0_i32 = arith.constant 0 : i32
    %c0_i32_0 = arith.constant 0 : i32
    %c0_i32_1 = arith.constant 0 : i32
    return %c0_i32, %c0_i32_0 : i32, i32
  }
  func.func @transform_2(%arg0: i32) -> (i32, i32) {
    %c0_i32 = arith.constant 0 : i32
    %c0_i32_0 = arith.constant 0 : i32
    %c0_i32_1 = arith.constant 0 : i32
    return %c0_i32, %c0_i32_0 : i32, i32
  }
  func.func @transform_3(%arg0: i32) -> (i32, i32) {
    %c0_i32 = arith.constant 0 : i32
    %c0_i32_0 = arith.constant 0 : i32
    %c0_i32_1 = arith.constant 0 : i32
    return %c0_i32, %c0_i32_0 : i32, i32
  }
  func.func @transform_4(%arg0: i32) -> (i32, i32) {
    %c0_i32 = arith.constant 0 : i32
    %c0_i32_0 = arith.constant 0 : i32
    %c0_i32_1 = arith.constant 0 : i32
    return %c0_i32, %c0_i32_0 : i32, i32
  }
  func.func @transform_5(%arg0: i32) -> (i32, i32) {
    %c0_i32 = arith.constant 0 : i32
    %c0_i32_0 = arith.constant 0 : i32
    return %c0_i32, %arg0 : i32, i32
  }
}

</mosaic_0001>

<bundles_post_ra>
// kernel: pi_forward_T.1
= control target key start
LH: loop header
LB: loop body
LE: loop exit
PB: predicated region body
PF: predicated region fallthrough
CT: control target
= control target key end

     0   :  { %vm112_vm0 = vcmask 1041408   ;;  %vm99_vm1 = vcmask 31744   ;;  %v333_v5 = vmov 0   ;;  %s419_s0 = inlined_call_operand.vmem [shape: bf16[4,128], index: 0, kind: input, shape index: {}]   ;;  %s420_s1 = inlined_call_operand.vmem [shape: bf16[64,4], index: 1, kind: input, shape index: {}]   ;;  %s421_s2 = inlined_call_operand.vmem [shape: f32[64,1], index: 2, kind: input, shape index: {}]   ;;  %s422_s3 = inlined_call_operand.vmem [shape: bf16[2,64], index: 3, kind: input, shape index: {}]   ;;  %s423_s4 = inlined_call_operand.vmem [shape: f32[2,1], index: 4, kind: input, shape index: {}]   ;;  %s424_s5 = inlined_call_operand.hbm [shape: f32[2,128], index: 5, kind: output, shape index: {}]  }
   0x1   :  { %v30_v0 = vld [vmem:[%s419_s0] sm:$0x3]  ;;  %v308_v3 = vld [vmem:[%s420_s1 + $0x8] sm:$0xff]   ;;  %v309_v4 = vld [vmem:[%s420_s1 + $0x10] sm:$0xff]   ;;  %305 = vset.pattern.permute.xlu0 %v333_v5  ;;  %306 = vset.pattern.permute.xlu1 %v333_v5 }
   0x2   :  { %v307_v1 = vld [vmem:[%s420_s1] sm:$0xff]   ;;  %300 = vmatprep.subr.msk.bf16.mxu0 %vm112_vm0, %v30_v0  ;;  %v114_v2 = vsel %vm112_vm0, %v30_v0, 0  ;;  %v37_v6 = vld [vmem:[%s421_s2 + $0x30] sm:$0xff]  ;;  %v38_v8 = vld [vmem:[%s421_s2 + $0x38] sm:$0xff] }
   0x3   :  { %279 = vmatpush3.bf16.msra.mxu0 %v114_v2  ;;  %280 = vmatprep.mubr.msk.bf16.mxu0 %vm99_vm1, %v307_v1  ;;  %v35_v7 = vld [vmem:[%s421_s2 + $0x20] sm:$0xff]  ;;  %v36_v9 = vld [vmem:[%s421_s2 + $0x28] sm:$0xff] }
   0x4   :  { %71 = vperm.xlu0 %305, %v37_v6   ;;  %61 = vperm.xlu1 %306, %v35_v7  }
   0x6   :  { %281 = vmatmul.mubr.msk.bf16.vlgmr.msra.gmra.mxu0 %vm99_vm1, %v308_v3 }
   0x7   :  { %284 = vmatprep.mubr.msk.bf16.mxu0 %vm99_vm1, %v309_v4 }
   0x8   :  { %10 = vsyncpa [#allocation3], 0  ;;  %v310_v10 = vld [vmem:[%s420_s1 + $0x18] sm:$0xff]   ;;  %76 = vperm.xlu0 %305, %v38_v8   ;;  %66 = vperm.xlu1 %306, %v36_v9   ;;  %v33_v11 = vld [vmem:[%s421_s2 + $0x10] sm:$0xff]  ;;  %v334_v16 = vmov 0.0   ;;  %vm335_vm2 = vmmov 0  }
   0x9   :  { %v34_v12 = vld [vmem:[%s421_s2 + $0x18] sm:$0xff]  ;;  %v31_v13 = vld [vmem:[%s421_s2] sm:$0xff]  ;;  %v32_v14 = vld [vmem:[%s421_s2 + $0x8] sm:$0xff]  ;;  %288 = vmatprep.subr.bf16.mxu1 %v334_v16  ;;  %296 = vmatprep.mubr.msk.bf16.mxu1 %vm335_vm2, %v334_v16  ;;  %vm200_vm3 = vcmask 523264   ;;  %s336_s19 = smov [#allocation2]  }
   0xa   :  { %v194_v15 = vld [vmem:[%s423_s4] sm:$0x3]  ;;  %s251_s20 = sshll.u32 %s336_s19, 4  ;;  %s252_s20 = int_to_ptr.vmem [resolvable:$true] %s251_s20 }
   0xb   :  { %v189_v53 = vld [vmem:[%s422_s3] sm:$0x1]  ;;  %s311_s21 = scalar_lea.vmem %s252_s20, 32  ;;  %p316_p1 = scmp.lt.s32.totalorder %s252_s20, %s252_s20 }
   0xc   :  { %51 = vperm.xlu0 %305, %v33_v11   ;;  %56 = vperm.xlu1 %306, %v34_v12   ;;  %p312_p0 = scmp.ne.s32.totalorder %s252_s20, %s311_s21  ;;  %p317_p2 = scmp.lt.s32.totalorder %s311_s21, %s311_s21 }
   0xe   :  { %285 = vmatmul.mubr.msk.bf16.gmra.mxu0 %vm99_vm1, %v310_v10  ;;  %p318_p3 = por %p317_p2, %p316_p1 }
  0x10   :  { %41 = vperm.xlu0 %305, %v31_v13   ;;  %46 = vperm.xlu1 %306, %v32_v14   ;;  %p319_p4 = pnand %p318_p3, %p312_p0 }
  0x14   :  { %197 = vperm.xlu0 %305, %v194_v15  }
  0x7f   :  { %v62_v17 = vpop.permute.xlu1 %61  ;;  %v72_v19 = vpop.permute.xlu0 %71 }
  0x83   :  { %v67_v22 = vpop.permute.xlu1 %66  ;;  %v77_v24 = vpop.permute.xlu0 %76 }
  0x87   :  { %v57_v28 = vpop.permute.xlu1 %56  ;;  %v52_v31 = vpop.permute.xlu0 %51 }
  0x8b   :  { %v47_v40 = vpop.permute.xlu1 %46  ;;  %v42_v43 = vpop.permute.xlu0 %41 }
  0x8f   :  { %v198_v54 = vpop.permute.xlu0 %197 }
  0xc6   :  { %v282_v18 = vpop.f32.mrf.mxu0 }
  0xc7   :  { %v159_v41 = vadd.f32 %v282_v18, %v52_v31 }
  0xc8   :  { %v150_v20 = vpop.f32.mrf.mxu0 }
  0xc9   :  { %v183_v47 = vmax.f32 %v159_v41, 0.0  ;;  %v151_v48 = vadd.f32 %v150_v20, %v42_v43 }
  0xca   :  { %v283_v21 = vpop.f32.mrf.mxu0 }
  0xcb   :  { %v162_v37 = vadd.f32 %v283_v21, %v57_v28  ;;  %v181_v51 = vmax.f32 %v151_v48, 0.0 }
  0xcc   :  { %v153_v23 = vpop.f32.mrf.mxu0 }
  0xcd   :  { %v184_v44 = vmax.f32 %v162_v37, 0.0  ;;  %v154_v45 = vadd.f32 %v153_v23, %v47_v40 }
  0xce   :  { %v286_v25 = vpop.f32.mrf.mxu0 }
  0xcf   :  { %v175_v27 = vadd.f32 %v286_v25, %v72_v19  ;;  %v191_v49 = vpack.c.bf16 %v184_v44, %v183_v47  ;;  %v182_v50 = vmax.f32 %v154_v45, 0.0 }
  0xd0   :  { %v166_v26 = vpop.f32.mrf.mxu0 }
  0xd1   :  { %v187_v33 = vmax.f32 %v175_v27, 0.0  ;;  %v167_v34 = vadd.f32 %v166_v26, %v62_v17  ;;  %v190_v52 = vpack.c.bf16 %v182_v50, %v181_v51 }
  0xd2   :  { %v287_v29 = vpop.f32.mrf.mxu0 }
  0xd3   :  { %v178_v30 = vadd.f32 %v287_v29, %v77_v24  ;;  %v185_v42 = vmax.f32 %v167_v34, 0.0 }
  0xd4   :  { %v169_v32 = vpop.f32.mrf.mxu0 }
  0xd5   :  { %v188_v35 = vmax.f32 %v178_v30, 0.0  ;;  %v170_v36 = vadd.f32 %v169_v32, %v67_v22 }
  0xd7   :  { %v186_v38 = vmax.f32 %v170_v36, 0.0  ;;  %v193_v39 = vpack.c.bf16 %v188_v35, %v187_v33 }
  0xd9   :  { %289 = vmatpush3.bf16.msra.mxu1 %v193_v39  ;;  %v192_v46 = vpack.c.bf16 %v186_v38, %v185_v42 }
  0xda   :  { %290 = vmatprep.subr.bf16.mxu1 %v334_v16 }
  0xdd   :  { %291 = vmatpush3.bf16.msra.mxu1 %v192_v46 }
  0xde   :  { %292 = vmatprep.subr.bf16.mxu1 %v334_v16 }
  0xe1   :  { %293 = vmatpush3.bf16.msra.mxu1 %v191_v49 }
  0xe2   :  { %294 = vmatprep.subr.bf16.mxu1 %v334_v16 }
  0xe5   :  { %295 = vmatpush3.bf16.msra.mxu1 %v190_v52 }
  0xe8   :  { %297 = vmatmul.mubr.msk.bf16.vlgmr.msra.gmra.mxu1 %vm200_vm3, %v189_v53 }
 0x1a8   :  { %v238_v55 = vpop.f32.mrf.mxu1 }
 0x1a9   :  { %v239_v56 = vadd.f32 %v238_v55, %v198_v54 }
 0x1aa   :  { %v298_v57 = vpop.f32.mrf.mxu1 }
 0x1ab   :  { %244 = vst [vmem:[#allocation2] sm:$0x3] %v239_v56 }
 0x1ac   :  { %v241_v58 = vpop.f32.mrf.mxu1 }
 0x1ad   :  { %322 = shalt.err (!%p319_p4)
}
 0x1ae   :  { %254 = dma.vmem_to_hbm [thread:$0]  %s252_s20, 32, %s424_s5, [#allocation3]   ;;  %v299_v59 = vpop.f32.mrf.mxu1 }
 0x1af   :  { %331 = dma.done.wait [#allocation3], 32  }
 0x1b0   :  { %332 = vsyncadd [#allocation3], 4294967264 }
 0x1b1   :  { %258 = vsyncpa [#allocation3], 1 }

</bundles_post_ra>
